<compile_context>
chip_gen: v6e
topology: v6e:2x2x1
jax: 0.10.0
libtpu: 0.0.40
codegen_flags: <defaults>
</compile_context>

<pallas_src>
import jax
import jax.numpy as jnp
from jax.experimental import pallas as pl
from jax.experimental.pallas import tpu as pltpu


def _round_up(x, m):
    return ((x + m - 1) // m) * m


def value_net_kernel(x_ref, w1_ref, b1_ref, w2_ref, b2_ref, w3_ref, b3_ref, o_ref):
    # Layer 1: MXU matmul (f32 accumulate) + bias + ReLU on full (TB, H_P) vregs.
    x = x_ref[...]
    h1 = jnp.dot(x, w1_ref[...], preferred_element_type=jnp.float32) + b1_ref[...]
    h1 = jnp.maximum(h1, 0.0)

    # Layer 2: same, feeding the MXU in the weights' dtype (bf16-friendly).
    h2 = jnp.dot(h1.astype(w2_ref.dtype), w2_ref[...],
                 preferred_element_type=jnp.float32) + b2_ref[...]
    h2 = jnp.maximum(h2, 0.0)

    # Layer 3 (out dim = 1): VPU multiply + XLU lane reduction instead of an N=1 MXU
    # matmul; pack the TB scalars lane-dense as a (1, TB) output row.
    out = jnp.sum(h2 * w3_ref[...], axis=-1)                     # (TB,)
    o_ref[...] = (out[None, :] + b3_ref[...]).astype(o_ref.dtype)  # (1, TB)


def value_network_forward(state, params, *, batch_tile=512):
    """state: [B, num_inputs] -> [B, 1] float32 (params stored as W[in, out])."""
    w1, b1, w2, b2, w3, b3 = params
    B, num_inputs = state.shape
    hidden = w1.shape[1]

    # Padded feature dims.
    H_P = _round_up(hidden, 128)      # full lane tile for activations / MXU N
    IN_P = _round_up(num_inputs, 8)   # sublane-aligned K; keep the state stream lean

    # Batch tiling: lane-dense output rows of width TB.
    TB = min(batch_tile, _round_up(B, 8))
    B_pad = _round_up(B, TB)
    n_tiles = B_pad // TB

    w_dtype = w1.dtype
    x_p = jnp.zeros((B_pad, IN_P), state.dtype).at[:B, :num_inputs].set(state)
    w1_p = jnp.zeros((IN_P, H_P), w_dtype).at[:num_inputs, :hidden].set(w1)
    w2_p = jnp.zeros((H_P, H_P), w_dtype).at[:hidden, :hidden].set(w2)
    w3_p = jnp.zeros((1, H_P), jnp.float32).at[0, :hidden].set(
        w3.reshape(-1).astype(jnp.float32))
    b1_p = jnp.zeros((1, H_P), jnp.float32).at[0, :hidden].set(b1.astype(jnp.float32))
    b2_p = jnp.zeros((1, H_P), jnp.float32).at[0, :hidden].set(b2.astype(jnp.float32))
    b3_p = b3.reshape(1, 1).astype(jnp.float32)

    # Weights/biases: constant block index -> fetched once, VMEM-resident.
    resident = lambda shape: pl.BlockSpec(shape, lambda i: (0, 0))

    cost = pl.CostEstimate(
        flops=2 * B_pad * (IN_P * H_P + H_P * H_P + H_P),
        transcendentals=0,
        bytes_accessed=(x_p.size * x_p.dtype.itemsize
                        + w1_p.size * w1_p.dtype.itemsize
                        + w2_p.size * w2_p.dtype.itemsize
                        + (w3_p.size + b1_p.size + b2_p.size + b3_p.size) * 4
                        + B_pad * 4),
    )

    out = pl.pallas_call(
        value_net_kernel,
        out_shape=jax.ShapeDtypeStruct((n_tiles, TB), jnp.float32),
        grid=(n_tiles,),
        in_specs=[
            pl.BlockSpec((TB, IN_P), lambda i: (i, 0)),   # state: batch-tiled, pipelined
            resident(w1_p.shape), resident(b1_p.shape),
            resident(w2_p.shape), resident(b2_p.shape),
            resident(w3_p.shape), resident(b3_p.shape),
        ],
        out_specs=pl.BlockSpec((1, TB), lambda i: (i, 0)),  # lane-dense output rows
        compiler_params=pltpu.CompilerParams(
            dimension_semantics=("parallel",),
            vmem_limit_bytes=32 * 1024 * 1024,
        ),
        cost_estimate=cost,
    )(x_p, w1_p, b1_p, w2_p, b2_p, w3_p, b3_p)

    # (n_tiles, TB) row-major == padded batch order; drop padding, restore [B, 1].
    return out.reshape(B_pad)[:B].reshape(B, 1)


def xavier_uniform(key, fan_in, fan_out, gain=1.0):
    # Matches torch.nn.init.xavier_uniform_ (gain=1) on a [out, in] weight; stored
    # transposed as [in, out] (same distribution, symmetric in the fans).
    limit = gain * jnp.sqrt(6.0 / (fan_in + fan_out))
    return jax.random.uniform(key, (fan_in, fan_out), jnp.float32, -limit, limit)


def init_params(key, num_inputs, hidden_dim):
    k1, k2, k3 = jax.random.split(key, 3)
    w1 = xavier_uniform(k1, num_inputs, hidden_dim)
    b1 = jnp.zeros((hidden_dim,), jnp.float32)
    w2 = xavier_uniform(k2, hidden_dim, hidden_dim)
    b2 = jnp.zeros((hidden_dim,), jnp.float32)
    w3 = xavier_uniform(k3, hidden_dim, 1)
    b3 = jnp.zeros((1,), jnp.float32)
    return (w1, b1, w2, b2, w3, b3)


def reference_forward(state, params):
    w1, b1, w2, b2, w3, b3 = params
    h1 = jnp.maximum(state @ w1 + b1, 0.0)
    h2 = jnp.maximum(h1 @ w2 + b2, 0.0)
    return h2 @ w3 + b3


if __name__ == "__main__":
    key = jax.random.PRNGKey(0)
    k_param, k_state = jax.random.split(key)

    batch, num_inputs, hidden_dim = 8, 16, 32
    params = init_params(k_param, num_inputs, hidden_dim)
    state = jax.random.normal(k_state, (batch, num_inputs), jnp.float32)

    out = value_network_forward(state, params)
    out = jax.block_until_ready(out)

    ref = reference_forward(state, params)
    assert out.shape == (batch, 1)
    assert jnp.allclose(out, ref, atol=1e-4, rtol=1e-4)

    print("KERNEL_OK")
</pallas_src>

<mosaic_0001>
module attributes {stable_mosaic.version = 11 : i64} {
  func.func @value_net_kernel(%arg0: i32, %arg1: memref<8x16xf32, #tpu.memory_space<vmem>>, %arg2: memref<16x128xf32, #tpu.memory_space<vmem>>, %arg3: memref<1x128xf32, #tpu.memory_space<vmem>>, %arg4: memref<128x128xf32, #tpu.memory_space<vmem>>, %arg5: memref<1x128xf32, #tpu.memory_space<vmem>>, %arg6: memref<1x128xf32, #tpu.memory_space<vmem>>, %arg7: memref<1x1xf32, #tpu.memory_space<vmem>>, %arg8: memref<1x8xf32, #tpu.memory_space<vmem>>) attributes {dimension_semantics = [#tpu.dimension_semantics<parallel>], iteration_bounds = array<i64: 1>, scalar_prefetch = 0 : i64, scratch_operands = 0 : i64, tpu.core_type = #tpu.core_type<tc>, window_params = [{transform_indices = @transform_0, window_bounds = array<i64: 8, 16>}, {pipeline_mode = #tpu.pipeline_mode<synchronous>, transform_indices = @transform_1, window_bounds = array<i64: 16, 128>}, {pipeline_mode = #tpu.pipeline_mode<synchronous>, transform_indices = @transform_2, window_bounds = array<i64: 1, 128>}, {pipeline_mode = #tpu.pipeline_mode<synchronous>, transform_indices = @transform_3, window_bounds = array<i64: 128, 128>}, {pipeline_mode = #tpu.pipeline_mode<synchronous>, transform_indices = @transform_4, window_bounds = array<i64: 1, 128>}, {pipeline_mode = #tpu.pipeline_mode<synchronous>, transform_indices = @transform_5, window_bounds = array<i64: 1, 128>}, {pipeline_mode = #tpu.pipeline_mode<synchronous>, transform_indices = @transform_6, window_bounds = array<i64: 1, 1>}, {transform_indices = @transform_7, window_bounds = array<i64: 1, 8>}]} {
    %c0 = arith.constant 0 : index
    %c0_0 = arith.constant 0 : index
    %0 = vector.load %arg1[%c0, %c0_0] : memref<8x16xf32, #tpu.memory_space<vmem>>, vector<8x16xf32>
    %c0_1 = arith.constant 0 : index
    %c0_2 = arith.constant 0 : index
    %1 = vector.load %arg2[%c0_1, %c0_2] : memref<16x128xf32, #tpu.memory_space<vmem>>, vector<16x128xf32>
    %cst = arith.constant dense<0.000000e+00> : vector<8x128xf32>
    %2 = tpu.matmul %0, %1, %cst {dimension_numbers = #tpu.dot_dimension_numbers<[1], [0], [0], [1], [0, 0, 1, 1], [], []>} : vector<8x16xf32>, vector<16x128xf32>, vector<8x128xf32> -> vector<8x128xf32>
    %c0_3 = arith.constant 0 : index
    %c0_4 = arith.constant 0 : index
    %3 = vector.load %arg3[%c0_3, %c0_4] : memref<1x128xf32, #tpu.memory_space<vmem>>, vector<1x128xf32>
    %4 = vector.broadcast %3 : vector<1x128xf32> to vector<8x128xf32>
    %5 = arith.addf %2, %4 : vector<8x128xf32>
    %cst_5 = arith.constant 0.000000e+00 : f32
    %6 = vector.broadcast %cst_5 : f32 to vector<8x128xf32>
    %7 = arith.maximumf %5, %6 : vector<8x128xf32>
    %c0_6 = arith.constant 0 : index
    %c0_7 = arith.constant 0 : index
    %8 = vector.load %arg4[%c0_6, %c0_7] : memref<128x128xf32, #tpu.memory_space<vmem>>, vector<128x128xf32>
    %cst_8 = arith.constant dense<0.000000e+00> : vector<8x128xf32>
    %9 = tpu.matmul %7, %8, %cst_8 {dimension_numbers = #tpu.dot_dimension_numbers<[1], [0], [0], [1], [0, 0, 1, 1], [], []>} : vector<8x128xf32>, vector<128x128xf32>, vector<8x128xf32> -> vector<8x128xf32>
    %c0_9 = arith.constant 0 : index
    %c0_10 = arith.constant 0 : index
    %10 = vector.load %arg5[%c0_9, %c0_10] : memref<1x128xf32, #tpu.memory_space<vmem>>, vector<1x128xf32>
    %11 = vector.broadcast %10 : vector<1x128xf32> to vector<8x128xf32>
    %12 = arith.addf %9, %11 : vector<8x128xf32>
    %cst_11 = arith.constant 0.000000e+00 : f32
    %13 = vector.broadcast %cst_11 : f32 to vector<8x128xf32>
    %14 = arith.maximumf %12, %13 : vector<8x128xf32>
    %c0_12 = arith.constant 0 : index
    %c0_13 = arith.constant 0 : index
    %15 = vector.load %arg6[%c0_12, %c0_13] : memref<1x128xf32, #tpu.memory_space<vmem>>, vector<1x128xf32>
    %16 = vector.broadcast %15 : vector<1x128xf32> to vector<8x128xf32>
    %17 = arith.mulf %14, %16 : vector<8x128xf32>
    %cst_14 = arith.constant dense<0.000000e+00> : vector<8xf32>
    %18 = vector.multi_reduction <add>, %17, %cst_14 [1] : vector<8x128xf32> to vector<8xf32>
    %19 = vector.shape_cast %18 : vector<8xf32> to vector<1x8xf32>
    %c0_15 = arith.constant 0 : index
    %c0_16 = arith.constant 0 : index
    %20 = vector.load %arg7[%c0_15, %c0_16] : memref<1x1xf32, #tpu.memory_space<vmem>>, vector<1x1xf32>
    %21 = vector.broadcast %20 : vector<1x1xf32> to vector<1x8xf32>
    %22 = arith.addf %19, %21 : vector<1x8xf32>
    %c0_17 = arith.constant 0 : index
    %c0_18 = arith.constant 0 : index
    %23 = vector.load %arg8[%c0_17, %c0_18] : memref<1x8xf32, #tpu.memory_space<vmem>>, vector<1x8xf32>
    tpu.vector_store %arg8[%c0_17, %c0_18], %22 {strides = array<i32>} : memref<1x8xf32, #tpu.memory_space<vmem>>, vector<1x8xf32>,
    return
  }
  func.func @transform_0(%arg0: i32) -> (i32, i32) {
    %c0_i32 = arith.constant 0 : i32
    %c0_i32_0 = arith.constant 0 : i32
    return %arg0, %c0_i32 : i32, i32
  }
  func.func @transform_1(%arg0: i32) -> (i32, i32) {
    %c0_i32 = arith.constant 0 : i32
    %c0_i32_0 = arith.constant 0 : i32
    %c0_i32_1 = arith.constant 0 : i32
    return %c0_i32, %c0_i32_0 : i32, i32
  }
  func.func @transform_2(%arg0: i32) -> (i32, i32) {
    %c0_i32 = arith.constant 0 : i32
    %c0_i32_0 = arith.constant 0 : i32
    %c0_i32_1 = arith.constant 0 : i32
    return %c0_i32, %c0_i32_0 : i32, i32
  }
  func.func @transform_3(%arg0: i32) -> (i32, i32) {
    %c0_i32 = arith.constant 0 : i32
    %c0_i32_0 = arith.constant 0 : i32
    %c0_i32_1 = arith.constant 0 : i32
    return %c0_i32, %c0_i32_0 : i32, i32
  }
  func.func @transform_4(%arg0: i32) -> (i32, i32) {
    %c0_i32 = arith.constant 0 : i32
    %c0_i32_0 = arith.constant 0 : i32
    %c0_i32_1 = arith.constant 0 : i32
    return %c0_i32, %c0_i32_0 : i32, i32
  }
  func.func @transform_5(%arg0: i32) -> (i32, i32) {
    %c0_i32 = arith.constant 0 : i32
    %c0_i32_0 = arith.constant 0 : i32
    %c0_i32_1 = arith.constant 0 : i32
    return %c0_i32, %c0_i32_0 : i32, i32
  }
  func.func @transform_6(%arg0: i32) -> (i32, i32) {
    %c0_i32 = arith.constant 0 : i32
    %c0_i32_0 = arith.constant 0 : i32
    %c0_i32_1 = arith.constant 0 : i32
    return %c0_i32, %c0_i32_0 : i32, i32
  }
  func.func @transform_7(%arg0: i32) -> (i32, i32) {
    %c0_i32 = arith.constant 0 : i32
    %c0_i32_0 = arith.constant 0 : i32
    return %arg0, %c0_i32 : i32, i32
  }
}

</mosaic_0001>

<bundles_post_ra>
// kernel: tpu_custom_call.1
= control target key start
LH: loop header
LB: loop body
LE: loop exit
PB: predicated region body
PF: predicated region fallthrough
CT: control target
= control target key end

     0   :  { %s529_s0 = inlined_call_operand.hbm [shape: f32[8,16], index: 0, kind: input, shape index: {}]   ;;  %s530_s1 = inlined_call_operand.hbm [shape: f32[16,128], index: 1, kind: input, shape index: {}]   ;;  %s531_s2 = inlined_call_operand.vmem [shape: f32[1,128], index: 2, kind: input, shape index: {}]   ;;  %s532_s3 = inlined_call_operand.hbm [shape: f32[128,128], index: 3, kind: input, shape index: {}]   ;;  %s533_s4 = inlined_call_operand.vmem [shape: f32[1,128], index: 4, kind: input, shape index: {}]   ;;  %s534_s5 = inlined_call_operand.vmem [shape: f32[1,128], index: 5, kind: input, shape index: {}]   ;;  %s535_s6 = inlined_call_operand.<no memory space> [shape: f32[1,1], index: 6, kind: input, shape index: {}]   ;;  %s536_s7 = inlined_call_operand.hbm [shape: f32[1,8], index: 7, kind: output, shape index: {}]  }
   0x1   :  { %v12_v0 = vstv %s535_s6 }
   0x2   :  { %13 = vst [vmem:[#allocation2] sm:$0x1] %v12_v0 }
   0x3   :  { %14 = vsyncpa [#allocation4], 0 }
   0x4   :  { %15 = vsyncpa [#allocation7], 0 }
   0x5   :  { %16 = vsyncpa [#allocation5], 0  ;;  %s456_s26 = smov [#allocation6]  }
   0x6   :  { %s32_s27 = sshll.u32 %s456_s26, 4  ;;  %s33_s27 = int_to_ptr.vmem [resolvable:$true] %s32_s27 }
   0x7   :  { %s378_s28 = scalar_lea.vmem %s33_s27, 256  ;;  %p383_p1 = scmp.lt.s32.totalorder %s33_s27, %s33_s27 }
   0x8   :  { %p379_p0 = scmp.ne.s32.totalorder %s33_s27, %s378_s28  ;;  %p384_p2 = scmp.lt.s32.totalorder %s378_s28, %s378_s28 }
   0xa   :  { %p385_p3 = por %p384_p2, %p383_p1 }
   0xc   :  { %p386_p4 = pnand %p385_p3, %p379_p0 }
   0xe   :  { %389 = shalt.err (!%p386_p4)
}
   0xf   :  { %s457_s29 = smov 128   ;;  %s458_s30 = smov 8  }
  0x10   :  { %38 = dma.hbm_to_vmem [thread:$0]  %s530_s1, 256, %s33_s27, [#allocation7], %s457_s29, %s457_s29, %s458_s30  }
  0x11   :  { %s459_s6 = smov [#allocation3]   ;;  %s460_s11 = smov [#allocation8]  }
  0x12   :  { %s23_s10 = sshll.u32 %s459_s6, 4  ;;  %s46_s12 = sshll.u32 %s460_s11, 4  ;;  %s24_s10 = int_to_ptr.vmem [resolvable:$true] %s23_s10  ;;  %s47_s12 = int_to_ptr.vmem [resolvable:$true] %s46_s12 }
  0x13   :  { %s398_s13 = scalar_lea.vmem %s24_s10, 128  ;;  %p403_p6 = scmp.lt.s32.totalorder %s24_s10, %s24_s10 }
  0x14   :  { %p399_p5 = scmp.ne.s32.totalorder %s24_s10, %s398_s13  ;;  %p404_p7 = scmp.lt.s32.totalorder %s398_s13, %s398_s13 }
  0x16   :  { %p405_p8 = por %p404_p7, %p403_p6 }
  0x18   :  { %p406_p9 = pnand %p405_p8, %p399_p5 }
  0x1a   :  { %409 = shalt.err (!%p406_p9)
}
  0x1b   :  { %26 = dma.hbm_to_vmem [thread:$0]  %s529_s0, 128, %s24_s10, [#allocation4]  }
  0x1c   :  { %s418_s16 = scalar_lea.vmem %s47_s12, 2048  ;;  %p423_p11 = scmp.lt.s32.totalorder %s47_s12, %s47_s12 }
  0x1d   :  { %p419_p10 = scmp.ne.s32.totalorder %s47_s12, %s418_s16  ;;  %p424_p12 = scmp.lt.s32.totalorder %s418_s16, %s418_s16 }
  0x1f   :  { %p425_p13 = por %p424_p12, %p423_p11 }
  0x21   :  { %p426_p0 = pnand %p425_p13, %p419_p10 }
  0x23   :  { %429 = shalt.err (!%p426_p0)
}
  0x24   :  { %52 = dma.hbm_to_vmem [thread:$0]  %s532_s3, 2048, %s47_s12, [#allocation7], %s457_s29, %s457_s29, %s458_s30  }
  0x25   :  { %450 = dma.done.wait [#allocation4], 128  }
  0x26   :  { %451 = vsyncadd [#allocation4], 4294967168 }
  0x27   :  { %452 = dma.done.wait [#allocation7], 2304  }
  0x28   :  { %453 = vsyncadd [#allocation7], 4294964992  ;;  %v461_v1 = vmov 0.0   ;;  %vm462_vm0 = vmmov 0   ;;  %v70_v2 = vld [vmem:[#allocation6 + $0x8] sm:$0xff]  ;;  %v69_v3 = vld [vmem:[#allocation6] sm:$0xff]  ;;  %v263_v35 = vlaneseq }
  0x29   :  { %318 = vmatprep.subr.mxu0 %v461_v1  ;;  %322 = vmatprep.mubr.msk.f32.mxu0 %vm462_vm0, %v461_v1  ;;  %v68_v4 = vld [vmem:[#allocation3] sm:$0xff]  ;;  %vm78_vm1 = vcmask 130048   ;;  %v168_v5 = vld [vmem:[#allocation8 + $0x78] sm:$0xff]  ;;  %v167_v6 = vld [vmem:[#allocation8 + $0x70] sm:$0xff]  ;;  %v463_v26 = vmov 0   ;;  %vm276_vm2 = vcmask 57344  }
  0x2a   :  { %325 = vmatprep.subr.mxu1 %v461_v1  ;;  %357 = vmatprep.mubr.msk.f32.mxu1 %vm462_vm0, %v461_v1  ;;  %v166_v7 = vld [vmem:[#allocation8 + $0x68] sm:$0xff]  ;;  %v165_v8 = vld [vmem:[#allocation8 + $0x60] sm:$0xff]  ;;  %v164_v9 = vld [vmem:[#allocation8 + $0x58] sm:$0xff]  ;;  %v264_v36 = vshrl.u32 %v263_v35, 7  ;;  %v270_v39 = vand.u32 127, %v263_v35 }
  0x2b   :  { %319 = vmatpush3.msra.mxu0 %v70_v2  ;;  %326 = vmatpush3.msra.mxu1 %v168_v5  ;;  %v163_v10 = vld [vmem:[#allocation8 + $0x50] sm:$0xff]  ;;  %v162_v11 = vld [vmem:[#allocation8 + $0x48] sm:$0xff]  ;;  %v161_v12 = vld [vmem:[#allocation8 + $0x40] sm:$0xff] }
  0x2c   :  { %320 = vmatprep.subr.mxu0 %v461_v1  ;;  %327 = vmatprep.subr.mxu1 %v461_v1  ;;  %v160_v13 = vld [vmem:[#allocation8 + $0x38] sm:$0xff]  ;;  %v159_v14 = vld [vmem:[#allocation8 + $0x30] sm:$0xff]  ;;  %v158_v15 = vld [vmem:[#allocation8 + $0x28] sm:$0xff]  ;;  %v265_v38 = vsub.s32 0, %v264_v36  ;;  %v273_v41 = vsub.s32 %v270_v39, %v264_v36 }
  0x2d   :  { %321 = vmatpush3.msra.mxu0 %v69_v3  ;;  %328 = vmatpush3.msra.mxu1 %v167_v6  ;;  %v157_v16 = vld [vmem:[#allocation8 + $0x20] sm:$0xff]  ;;  %v156_v17 = vld [vmem:[#allocation8 + $0x18] sm:$0xff]  ;;  %v155_v18 = vld [vmem:[#allocation8 + $0x10] sm:$0xff] }
  0x2e   :  { %323 = vmatmul.mubr.msk.f32.vlgmr.msra.gmra.mxu0 %vm78_vm1, %v68_v4  ;;  %329 = vmatprep.subr.mxu1 %v461_v1  ;;  %v154_v19 = vld [vmem:[#allocation8 + $0x8] sm:$0xff]  ;;  %v153_v20 = vld [vmem:[#allocation8] sm:$0xff] }
  0x2f   :  { %330 = vmatpush3.msra.mxu1 %v166_v7  ;;  %v294_v21 = vld [vmem:[%s531_s2] ss:$0 sm:$0xff]  ;;  %369 = vset.pattern.permute.xlu0 %v463_v26  ;;  %s464_s2 = smov [#allocation9]  }
  0x30   :  { %331 = vmatprep.subr.mxu1 %v461_v1  ;;  %v296_v27 = vld [vmem:[%s533_s4] ss:$0 sm:$0xff]  ;;  %s284_s4 = sshll.u32 %s464_s2, 4  ;;  %s285_s4 = int_to_ptr.vmem [resolvable:$true] %s284_s4 }
  0x31   :  { %332 = vmatpush3.msra.mxu1 %v165_v8  ;;  %v297_v31 = vld [vmem:[%s534_s5] ss:$0 sm:$0xff]  ;;  %s430_s5 = scalar_lea.vmem %s285_s4, 16  ;;  %s434_s22 = scalar_lea.vmem %s285_s4, 32 }
  0x32   :  { %333 = vmatprep.subr.mxu1 %v461_v1  ;;  %v257_v34 = vld [vmem:[#allocation2] sm:$0x1]  ;;  %p431_p1 = scmp.ne.s32.totalorder %s285_s4, %s430_s5  ;;  %p435_p2 = scmp.lt.s32.totalorder %s285_s4, %s285_s4 }
  0x33   :  { %334 = vmatpush3.msra.mxu1 %v164_v9  ;;  %p436_p3 = scmp.lt.s32.totalorder %s434_s22, %s430_s5 }
  0x34   :  { %335 = vmatprep.subr.mxu1 %v461_v1 }
  0x35   :  { %336 = vmatpush3.msra.mxu1 %v163_v10  ;;  %p437_p4 = por %p436_p3, %p435_p2 }
  0x36   :  { %337 = vmatprep.subr.mxu1 %v461_v1 }
  0x37   :  { %338 = vmatpush3.msra.mxu1 %v162_v11  ;;  %p438_p5 = pnand %p437_p4, %p431_p1 }
  0x38   :  { %339 = vmatprep.subr.mxu1 %v461_v1 }
  0x39   :  { %340 = vmatpush3.msra.mxu1 %v161_v12 }
  0x3a   :  { %341 = vmatprep.subr.mxu1 %v461_v1 }
  0x3b   :  { %342 = vmatpush3.msra.mxu1 %v160_v13 }
  0x3c   :  { %343 = vmatprep.subr.mxu1 %v461_v1 }
  0x3d   :  { %344 = vmatpush3.msra.mxu1 %v159_v14 }
  0x3e   :  { %345 = vmatprep.subr.mxu1 %v461_v1 }
  0x3f   :  { %346 = vmatpush3.msra.mxu1 %v158_v15 }
  0x40   :  { %347 = vmatprep.subr.mxu1 %v461_v1 }
  0x41   :  { %348 = vmatpush3.msra.mxu1 %v157_v16 }
  0x42   :  { %349 = vmatprep.subr.mxu1 %v461_v1 }
  0x43   :  { %350 = vmatpush3.msra.mxu1 %v156_v17 }
  0x44   :  { %351 = vmatprep.subr.mxu1 %v461_v1 }
  0x45   :  { %352 = vmatpush3.msra.mxu1 %v155_v18 }
  0x46   :  { %353 = vmatprep.subr.mxu1 %v461_v1 }
  0x47   :  { %354 = vmatpush3.msra.mxu1 %v154_v19 }
  0x48   :  { %355 = vmatprep.subr.mxu1 %v461_v1 }
  0x49   :  { %356 = vmatpush3.msra.mxu1 %v153_v20 }
  0xee   :  { %v148_v22 = vpop.f32.mrf.mxu0 }
  0xef   :  { %v149_v23 = vadd.f32 %v294_v21, %v148_v22 }
  0xf0   :  { %v324_v24 = vpop.f32.mrf.mxu0 }
  0xf1   :  { %v152_v25 = vmax.f32 %v149_v23, 0.0 }
  0xf3   :  { %358 = vmatmul.mubr.f32.vlgmr.msra.gmra.mxu1 %v152_v25 }
 0x1b3   :  { %v242_v28 = vpop.f32.mrf.mxu1 }
 0x1b4   :  { %v243_v29 = vadd.f32 %v296_v27, %v242_v28 }
 0x1b5   :  { %v359_v30 = vpop.f32.mrf.mxu1 }
 0x1b6   :  { %v246_v32 = vmax.f32 %v243_v29, 0.0 }
 0x1b8   :  { %v254_v33 = vmul.f32 %v297_v31, %v246_v32 }
 0x1ba   :  { %255 = vadd.xlane.f32.xlu0 %v254_v33 }
 0x1d0   :  { %260 = vperm.xlu0 %369, %v257_v34  }
 0x243   :  { %v256_v37 = vpop.xlane.xlu0 %255 }
 0x24b   :  { %v261_v40 = vpop.permute.xlu0 %260 }
 0x24c   :  { %v266_v42 = vrot.slane %v261_v40, %v265_v38 }
 0x24e   :  { %v267_v43 = vadd.f32 %v266_v42, %v256_v37 }
 0x250   :  { %v274_v44 = vrot.slane %v267_v43, %v273_v41 }
 0x252   :  { %277 = vst.msk [vmem:[#allocation9] sm:$0x1] %vm276_vm2, %v274_v44 }
 0x253   :  { %441 = shalt.err (!%p438_p5)
}
 0x254   :  { %287 = dma.vmem_to_hbm [thread:$0]  %s285_s4, 16, %s536_s7, [#allocation5]  }
 0x255   :  { %454 = dma.done.wait [#allocation5], 16  }
 0x256   :  { %455 = vsyncadd [#allocation5], 4294967280 }
 0x257   :  { %291 = vsyncpa [#allocation4], 1 }
 0x258   :  { %292 = vsyncpa [#allocation7], 1 }
 0x259   :  { %293 = vsyncpa [#allocation5], 1 }

</bundles_post_ra>
